<compile_context>
chip_gen: v6e
topology: v6e:2x2x1
jax: 0.10.0
libtpu: 0.0.40
codegen_flags: <defaults>
</compile_context>

<pallas_src>
import jax
import jax.numpy as jnp
from jax.experimental import pallas as pl
from jax.experimental.pallas import tpu as pltpu


def _bias_kernel(alpha_ref, beta_ref, x_ref, o_ref):
    # alpha_ref / beta_ref: (1,) f32 scalars in SMEM; x_ref / o_ref: VMEM tiles.
    alpha = alpha_ref[0]
    beta = beta_ref[0]
    y = alpha * x_ref[...].astype(jnp.float32) + beta
    o_ref[...] = y.astype(o_ref.dtype)


def bias_layer(x, alpha, beta, *, target_block_bytes=2 * 1024 * 1024):
    """y = alpha * x + beta elementwise via a Pallas TPU kernel.

    x:     any-shaped float array (NCHW in the reference module).
    alpha: scalar parameter, shape (1,) (like the torch Parameter).
    beta:  scalar parameter, shape (1,) (like the torch Parameter).
    """
    orig_shape = x.shape
    orig_dtype = x.dtype
    n = x.size
    itemsize = jnp.dtype(orig_dtype).itemsize

    # --- choose a lane-dense (rows, width) view, zero-copy when possible ---
    width = None
    for cand in (16384, 8192, 4096, 2048, 1024, 512, 256, 128):
        if n % cand == 0:
            width = cand
            break

    if width is not None:
        rows = n // width
        x2d = x.reshape(rows, width)                  # pure metadata reshape
        padded = False
    else:
        # Odd total size: minimal pad to a (rows, 128) slab.
        width = 128
        n_pad = pl.cdiv(n, width) * width
        x2d = jnp.pad(x.reshape(-1), (0, n_pad - n)).reshape(-1, width)
        rows = n_pad // width
        padded = True

    # --- block size: ~target_block_bytes per block -------------------------
    max_rows = max(1, target_block_bytes // (width * itemsize))
    if max_rows >= rows:
        tile_rows = rows                               # full row extent (always legal)
    else:
        tile_rows = max(8, (max_rows // 8) * 8)        # multiple of 8 sublanes
        if tile_rows >= rows:
            tile_rows = rows

    grid = (pl.cdiv(rows, tile_rows),)

    alpha1d = jnp.asarray(alpha, jnp.float32).reshape(1)
    beta1d = jnp.asarray(beta, jnp.float32).reshape(1)

    cost = pl.CostEstimate(
        flops=2 * n,
        transcendentals=0,
        bytes_accessed=2 * n * itemsize,
    )

    out = pl.pallas_call(
        _bias_kernel,
        out_shape=jax.ShapeDtypeStruct(x2d.shape, orig_dtype),
        grid_spec=pltpu.PrefetchScalarGridSpec(
            num_scalar_prefetch=0,
            grid=grid,
            in_specs=[
                pl.BlockSpec(memory_space=pltpu.SMEM),          # alpha (1,)
                pl.BlockSpec(memory_space=pltpu.SMEM),          # beta  (1,)
                pl.BlockSpec((tile_rows, width), lambda i: (i, 0)),
            ],
            out_specs=pl.BlockSpec((tile_rows, width), lambda i: (i, 0)),
        ),
        compiler_params=pltpu.CompilerParams(
            dimension_semantics=("parallel",),
            vmem_limit_bytes=32 * 1024 * 1024,
        ),
        cost_estimate=cost,
    )(alpha1d, beta1d, x2d)

    if padded:
        return out.reshape(-1)[:n].reshape(orig_shape)
    return out.reshape(orig_shape)


if __name__ == "__main__":
    key = jax.random.PRNGKey(0)

    # Module init: alpha = ones(1), beta = zeros(1).  Perturb slightly so the
    # affine transform is non-trivial but still deterministic.
    alpha = jnp.ones((1,), jnp.float32) * 1.5
    beta = jnp.zeros((1,), jnp.float32) + 0.25

    # NCHW input, small shapes (batch=2, channels=4, spatial=16).
    x = jax.random.normal(key, (2, 4, 16, 16), dtype=jnp.float32)

    y = jax.block_until_ready(bias_layer(x, alpha, beta))
    y_ref = alpha[0] * x + beta[0]
    assert y.shape == x.shape and y.dtype == x.dtype
    assert jnp.allclose(y, y_ref, atol=1e-6, rtol=1e-6)

    # bf16 input exercises the explicit output cast.
    xb = x.astype(jnp.bfloat16)
    yb = jax.block_until_ready(bias_layer(xb, alpha, beta))
    yb_ref = (alpha[0] * xb.astype(jnp.float32) + beta[0]).astype(jnp.bfloat16)
    assert yb.dtype == jnp.bfloat16
    assert jnp.allclose(yb.astype(jnp.float32), yb_ref.astype(jnp.float32),
                        atol=1e-2, rtol=1e-2)

    # Odd total size exercises the (rare) padded fallback path.
    xo = jax.random.normal(jax.random.PRNGKey(1), (3, 5, 7), dtype=jnp.float32)
    yo = jax.block_until_ready(bias_layer(xo, alpha, beta))
    assert jnp.allclose(yo, alpha[0] * xo + beta[0], atol=1e-6, rtol=1e-6)

    print("KERNEL_OK")
</pallas_src>

<mosaic_0001>
module attributes {stable_mosaic.version = 11 : i64} {
  func.func @_bias_kernel(%arg0: i32, %arg1: memref<1xf32, #tpu.memory_space<smem>>, %arg2: memref<1xf32, #tpu.memory_space<smem>>, %arg3: memref<1x2048xf32, #tpu.memory_space<vmem>>, %arg4: memref<1x2048xf32, #tpu.memory_space<vmem>>) attributes {dimension_semantics = [#tpu.dimension_semantics<parallel>], iteration_bounds = array<i64: 1>, scalar_prefetch = 0 : i64, scratch_operands = 0 : i64, tpu.core_type = #tpu.core_type<tc>, window_params = [{transform_indices = @transform_0, window_bounds = array<i64: 1>}, {transform_indices = @transform_1, window_bounds = array<i64: 1>}, {transform_indices = @transform_2, window_bounds = array<i64: 1, 2048>}, {transform_indices = @transform_3, window_bounds = array<i64: 1, 2048>}]} {
    %c0 = arith.constant 0 : index
    %0 = memref.load %arg1[%c0] : memref<1xf32, #tpu.memory_space<smem>>
    %c0_0 = arith.constant 0 : index
    %1 = memref.load %arg2[%c0_0] : memref<1xf32, #tpu.memory_space<smem>>
    %c0_1 = arith.constant 0 : index
    %c0_2 = arith.constant 0 : index
    %2 = vector.load %arg3[%c0_1, %c0_2] : memref<1x2048xf32, #tpu.memory_space<vmem>>, vector<1x2048xf32>
    %3 = vector.broadcast %0 : f32 to vector<1x2048xf32>
    %4 = arith.mulf %3, %2 : vector<1x2048xf32>
    %5 = vector.broadcast %1 : f32 to vector<1x2048xf32>
    %6 = arith.addf %4, %5 : vector<1x2048xf32>
    %c0_3 = arith.constant 0 : index
    %c0_4 = arith.constant 0 : index
    %7 = vector.load %arg4[%c0_3, %c0_4] : memref<1x2048xf32, #tpu.memory_space<vmem>>, vector<1x2048xf32>
    tpu.vector_store %arg4[%c0_3, %c0_4], %6 {strides = array<i32>} : memref<1x2048xf32, #tpu.memory_space<vmem>>, vector<1x2048xf32>,
    return
  }
  func.func @transform_0(%arg0: i32) -> i32 {
    %c0_i32 = arith.constant 0 : i32
    %c0_i32_0 = arith.constant 0 : i32
    return %c0_i32 : i32
  }
  func.func @transform_1(%arg0: i32) -> i32 {
    %c0_i32 = arith.constant 0 : i32
    %c0_i32_0 = arith.constant 0 : i32
    return %c0_i32 : i32
  }
  func.func @transform_2(%arg0: i32) -> (i32, i32) {
    %c0_i32 = arith.constant 0 : i32
    %c0_i32_0 = arith.constant 0 : i32
    return %arg0, %c0_i32 : i32, i32
  }
  func.func @transform_3(%arg0: i32) -> (i32, i32) {
    %c0_i32 = arith.constant 0 : i32
    %c0_i32_0 = arith.constant 0 : i32
    return %arg0, %c0_i32 : i32, i32
  }
}

</mosaic_0001>

<bundles_post_ra>
// kernel: tpu_custom_call.1
= control target key start
LH: loop header
LB: loop body
LE: loop exit
PB: predicated region body
PF: predicated region fallthrough
CT: control target
= control target key end

     0   :  { %10 = vsyncpa [#allocation5], 0  ;;  %s136_s0 = inlined_call_operand.<no memory space> [shape: f32[1], index: 0, kind: input, shape index: {}]   ;;  %s137_s1 = inlined_call_operand.<no memory space> [shape: f32[1], index: 1, kind: input, shape index: {}]   ;;  %s138_s2 = inlined_call_operand.hbm [shape: f32[1,2048], index: 2, kind: input, shape index: {}]   ;;  %s139_s3 = inlined_call_operand.hbm [shape: f32[1,2048], index: 3, kind: output, shape index: {}]  }
   0x1   :  { %11 = vsyncpa [#allocation6], 0  ;;  %s102_s12 = smov [#allocation4]  }
   0x2   :  { %s22_s13 = sshll.u32 %s102_s12, 4  ;;  %s23_s13 = int_to_ptr.vmem [resolvable:$true] %s22_s13 }
   0x3   :  { %s66_s14 = scalar_lea.vmem %s23_s13, 256  ;;  %p71_p1 = scmp.lt.s32.totalorder %s23_s13, %s23_s13 }
   0x4   :  { %p67_p0 = scmp.ne.s32.totalorder %s23_s13, %s66_s14  ;;  %p72_p2 = scmp.lt.s32.totalorder %s66_s14, %s66_s14 }
   0x6   :  { %p73_p3 = por %p72_p2, %p71_p1 }
   0x8   :  { %p74_p4 = pnand %p73_p3, %p67_p0 }
   0xa   :  { %77 = shalt.err (!%p74_p4)
}
   0xb   :  { %25 = dma.hbm_to_vmem [thread:$0]  %s138_s2, 256, %s23_s13, [#allocation5]  }
   0xc   :  { %98 = dma.done.wait [#allocation5], 256  }
   0xd   :  { %99 = vsyncadd [#allocation5], 4294967040  ;;  %v33_v0 = vstv %s136_s0  ;;  %v31_v1 = vld [vmem:[#allocation4] sm:$0xff]  ;;  %v36_v2 = vstv %s137_s1  ;;  %v32_v3 = vld [vmem:[#allocation4 + $0x8] sm:$0xff]  ;;  %s103_s21 = smov [#allocation7]  }
   0xe   :  { %s47_s22 = sshll.u32 %s103_s21, 4  ;;  %v34_v4 = vmul.f32 %v33_v0, %v31_v1  ;;  %v35_v5 = vmul.f32 %v33_v0, %v32_v3  ;;  %s48_s22 = int_to_ptr.vmem [resolvable:$true] %s47_s22 }
   0xf   :  { %s78_s2 = scalar_lea.vmem %s48_s22, 256  ;;  %p83_p6 = scmp.lt.s32.totalorder %s48_s22, %s48_s22 }
  0x10   :  { %v37_v6 = vadd.f32 %v36_v2, %v34_v4  ;;  %v38_v7 = vadd.f32 %v36_v2, %v35_v5  ;;  %p79_p5 = scmp.ne.s32.totalorder %s48_s22, %s78_s2  ;;  %p84_p7 = scmp.lt.s32.totalorder %s78_s2, %s78_s2 }
  0x12   :  { %39 = vst [vmem:[#allocation7] sm:$0xff] %v37_v6  ;;  %40 = vst [vmem:[#allocation7 + $0x8] sm:$0xff] %v38_v7  ;;  %p85_p8 = por %p84_p7, %p83_p6 }
  0x14   :  { %p86_p9 = pnand %p85_p8, %p79_p5 }
  0x16   :  { %89 = shalt.err (!%p86_p9)
}
  0x17   :  { %50 = dma.vmem_to_hbm [thread:$0]  %s48_s22, 256, %s139_s3, [#allocation6]  }
  0x18   :  { %100 = dma.done.wait [#allocation6], 256  }
  0x19   :  { %101 = vsyncadd [#allocation6], 4294967040 }
  0x1a   :  { %54 = vsyncpa [#allocation5], 1 }
  0x1b   :  { %55 = vsyncpa [#allocation6], 1 }

</bundles_post_ra>
